<compile_context>
chip_gen: v6e
topology: v6e:2x2x1
jax: 0.10.0
libtpu: 0.0.40
codegen_flags: <defaults>
</compile_context>

<pallas_src>
import math

import jax
import jax.numpy as jnp
from jax.experimental import pallas as pl
from jax.experimental.pallas import tpu as pltpu


def _cdiv(a, b):
    return -(-a // b)


def _round_up(v, m):
    return ((v + m - 1) // m) * m


def _vmem_capacity_bytes():
    """Best-effort physical VMEM query; 64 MiB fallback is v7x-safe."""
    try:
        info = pltpu.get_tpu_info()
        cap = getattr(info, "vmem_capacity_bytes", None)
        if cap:
            return int(cap)
    except Exception:
        pass
    return 64 * 1024 * 1024


def _make_single_k_kernel(use_bias):
    # One K block = full feature dim per tile.
    def compute(x_ref, w_ref):
        # (tb, F) x (1, F) contracting F -> (tb, 1); x stays untransposed.
        return jax.lax.dot_general(
            x_ref[...], w_ref[...],
            dimension_numbers=(((1,), (1,)), ((), ())),
            preferred_element_type=jnp.float32)

    if use_bias:
        def kernel(x_ref, w_ref, b_ref, o_ref):
            o_ref[...] = (compute(x_ref, w_ref) + b_ref[0]).astype(o_ref.dtype)
    else:
        def kernel(x_ref, w_ref, o_ref):
            o_ref[...] = compute(x_ref, w_ref).astype(o_ref.dtype)
    return kernel


def _make_k_tiled_kernel(use_bias, feat, tk, ragged_k):
    # grid = (row_tiles, k_tiles); K is the innermost "arbitrary" reduction
    # axis; a (tb, 1) f32 VMEM scratch accumulates across K blocks.
    def step(x_ref, w_ref, o_ref, acc_ref, bias_val):
        k = pl.program_id(1)

        @pl.when(k == 0)
        def _():
            acc_ref[...] = jnp.zeros_like(acc_ref)

        xv = x_ref[...]
        wv = w_ref[...]
        if ragged_k:
            # Last K block reads past F: zero BOTH operands' out-of-range
            # columns so garbage (possibly NaN/Inf) cannot pollute the sum.
            rem = feat - k * tk
            xv = jnp.where(
                jax.lax.broadcasted_iota(jnp.int32, xv.shape, 1) < rem,
                xv, jnp.zeros_like(xv))
            wv = jnp.where(
                jax.lax.broadcasted_iota(jnp.int32, wv.shape, 1) < rem,
                wv, jnp.zeros_like(wv))

        acc_ref[...] += jax.lax.dot_general(
            xv, wv,
            dimension_numbers=(((1,), (1,)), ((), ())),
            preferred_element_type=jnp.float32)

        @pl.when(k == pl.num_programs(1) - 1)
        def _():
            out = acc_ref[...]
            if bias_val is not None:
                out = out + bias_val
            o_ref[...] = out.astype(o_ref.dtype)

    if use_bias:
        def kernel(x_ref, w_ref, b_ref, o_ref, acc_ref):
            step(x_ref, w_ref, o_ref, acc_ref, b_ref[0])
    else:
        def kernel(x_ref, w_ref, o_ref, acc_ref):
            step(x_ref, w_ref, o_ref, acc_ref, None)
    return kernel


def pallas_linear(x, weight, bias=None):
    """y = x @ weight.T (+ bias); weight: (1, F) as in torch nn.Linear(F, 1)."""
    orig_shape = x.shape
    F = int(orig_shape[-1])
    x2d = x.reshape(-1, F)
    N = int(x2d.shape[0])
    out_dtype = x.dtype
    itemsize = jnp.dtype(x.dtype).itemsize

    # Generation-aware VMEM budgets (v5e/v6e: 128 MiB physical; v7x: 64 MiB).
    vmem_cap = _vmem_capacity_bytes()
    big_vmem = vmem_cap >= 96 * 1024 * 1024
    x_block_target = (8 if big_vmem else 6) * 1024 * 1024  # per x block (double-buffered)
    vmem_limit = int(min((vmem_cap * 3) // 4, 96 * 1024 * 1024))

    row_bytes = F * itemsize
    if 128 * row_bytes <= x_block_target:
        # Full feature dim fits per block: byte-target the row-tile size.
        tk = F
        tb = max(128, ((x_block_target // row_bytes) // 128) * 128)
        # TODO(synk): if DMA gaps show up in profiles for small F, add
        # pipeline_mode=pl.Buffered(3) to the x BlockSpec (budget permitting).
    else:
        # Very large F: tile the reduction axis so VMEM stays bounded.
        tb = 512
        tk = max(128, ((x_block_target // (tb * itemsize)) // 128) * 128)
    k_tiles = _cdiv(F, tk)
    ragged_k = (F % tk) != 0

    # Guarantee >= 2 row tiles so dual-TC chips (v7x) get both cores busy.
    if N > 256:
        tb = min(tb, max(128, _round_up(_cdiv(N, 2), 128)))

    # No full jnp.pad over the batch. Correctness of ragged last blocks relies
    # on per-row independence of the output (extra rows are never stored).
    pad_rows = 0
    if N <= tb:
        tb = _round_up(max(N, 1), 8)
        pad_rows = tb - N          # < 8 rows; only when a single tile suffices
        if pad_rows:
            x2d = jnp.pad(x2d, ((0, pad_rows), (0, 0)))
    n_rows = N + pad_rows
    grid_n = _cdiv(n_rows, tb)

    # Uniform-precision MXU pass; accumulation stays f32 (precision contract:
    # f32 accumulate regardless of x dtype).
    w = jnp.asarray(weight).reshape(1, F).astype(x.dtype)

    cost = pl.CostEstimate(
        flops=2 * N * F,
        transcendentals=0,
        bytes_accessed=N * F * itemsize + N * itemsize + F * itemsize)

    use_bias = bias is not None
    if k_tiles == 1:
        grid = (grid_n,)
        in_specs = [pl.BlockSpec((tb, F), lambda i: (i, 0)),
                    pl.BlockSpec((1, F), lambda i: (0, 0))]
        out_spec = pl.BlockSpec((tb, 1), lambda i: (i, 0))
        scratch = []
        dims = ("parallel",)
        kernel = _make_single_k_kernel(use_bias)
    else:
        grid = (grid_n, k_tiles)
        in_specs = [pl.BlockSpec((tb, tk), lambda i, k: (i, k)),
                    pl.BlockSpec((1, tk), lambda i, k: (0, k))]
        out_spec = pl.BlockSpec((tb, 1), lambda i, k: (i, 0))
        scratch = [pltpu.VMEM((tb, 1), jnp.float32)]
        dims = ("parallel", "arbitrary")
        kernel = _make_k_tiled_kernel(use_bias, F, tk, ragged_k)

    args = [x2d, w]
    if use_bias:
        in_specs.append(pl.BlockSpec(memory_space=pltpu.MemorySpace.SMEM))
        args.append(jnp.asarray(bias).reshape(1).astype(jnp.float32))

    out = pl.pallas_call(
        kernel,
        out_shape=jax.ShapeDtypeStruct((n_rows, 1), out_dtype),
        grid_spec=pltpu.PrefetchScalarGridSpec(
            num_scalar_prefetch=0,
            grid=grid,
            in_specs=in_specs,
            out_specs=out_spec,
            scratch_shapes=scratch),
        compiler_params=pltpu.CompilerParams(
            dimension_semantics=dims,
            vmem_limit_bytes=vmem_limit),
        cost_estimate=cost,
    )(*args)

    out = out[:N]
    return out.reshape(orig_shape[:-1] + (1,))


class LinearPallas:
    """Mirror of the PyTorch Linear module (out_features = 1)."""

    def __init__(self, input_features, dropout=0.0, use_bias=False, key=None):
        if key is None:
            key = jax.random.PRNGKey(0)
        kw, kb = jax.random.split(key)
        # Deterministic init (stand-in for weight_init): torch-default uniform.
        bound = 1.0 / math.sqrt(float(input_features))
        self.weight = jax.random.uniform(
            kw, (1, input_features), jnp.float32, -bound, bound)
        self.bias = (jax.random.uniform(kb, (1,), jnp.float32, -bound, bound)
                     if use_bias else None)
        self.dropout = dropout  # identity at p=0 / eval

    def __call__(self, x):
        return pallas_linear(x, self.weight, self.bias)


if __name__ == "__main__":
    key = jax.random.PRNGKey(0)
    k_in, k_in2, k_in3, k_m1, k_m2 = jax.random.split(key, 5)

    batch, features = 8, 32
    x = jax.random.normal(k_in, (batch, features), jnp.float32)

    # 1) No-bias path (module default), small 2-D input.
    model = LinearPallas(input_features=features, dropout=0.0, use_bias=False, key=k_m1)
    y = jax.block_until_ready(model(x))
    y_ref = x @ model.weight.T
    assert y.shape == (batch, 1), y.shape
    assert jnp.allclose(y, y_ref, atol=1e-5, rtol=1e-5)

    # 2) Bias path, 3-D input (exercises the leading-dim flatten).
    x3 = jax.random.normal(k_in2, (2, 8, features), jnp.float32)
    model_b = LinearPallas(input_features=features, dropout=0.0, use_bias=True, key=k_m2)
    yb = jax.block_until_ready(model_b(x3))
    yb_ref = x3 @ model_b.weight.T + model_b.bias
    assert yb.shape == (2, 8, 1), yb.shape
    assert jnp.allclose(yb, yb_ref, atol=1e-5, rtol=1e-5)

    # 3) Unaligned batch: > 1 row tile with a partial last block, no wrapper pad.
    xr = jax.random.normal(k_in3, (1000, features), jnp.float32)
    yr = jax.block_until_ready(model(xr))
    yr_ref = xr @ model.weight.T
    assert yr.shape == (1000, 1), yr.shape
    assert jnp.allclose(yr, yr_ref, atol=1e-5, rtol=1e-5)

    # 4) Very large F: exercises the K-tiled (bounded-VMEM) reduction path.
    big_f = 40000
    kb1, kb2 = jax.random.split(jax.random.PRNGKey(1))
    xk = jax.random.normal(kb1, (16, big_f), jnp.float32)
    wk = jax.random.uniform(kb2, (1, big_f), jnp.float32,
                            -1.0 / math.sqrt(big_f), 1.0 / math.sqrt(big_f))
    yk = jax.block_until_ready(pallas_linear(xk, wk))
    yk_ref = jnp.einsum("nf,of->no", xk, wk,
                        precision=jax.lax.Precision.HIGHEST)
    assert yk.shape == (16, 1), yk.shape
    assert jnp.allclose(yk, yk_ref, atol=1e-3, rtol=1e-3)

    print("KERNEL_OK")
</pallas_src>

<mosaic_0001>
module attributes {stable_mosaic.version = 11 : i64} {
  func.func @kernel(%arg0: i32, %arg1: memref<8x32xf32, #tpu.memory_space<vmem>>, %arg2: memref<1x32xf32, #tpu.memory_space<vmem>>, %arg3: memref<8x1xf32, #tpu.memory_space<vmem>>) attributes {dimension_semantics = [#tpu.dimension_semantics<parallel>], iteration_bounds = array<i64: 1>, scalar_prefetch = 0 : i64, scratch_operands = 0 : i64, tpu.core_type = #tpu.core_type<tc>, window_params = [{transform_indices = @transform_0, window_bounds = array<i64: 8, 32>}, {pipeline_mode = #tpu.pipeline_mode<synchronous>, transform_indices = @transform_1, window_bounds = array<i64: 1, 32>}, {transform_indices = @transform_2, window_bounds = array<i64: 8, 1>}]} {
    %c0 = arith.constant 0 : index
    %c0_0 = arith.constant 0 : index
    %0 = vector.load %arg1[%c0, %c0_0] : memref<8x32xf32, #tpu.memory_space<vmem>>, vector<8x32xf32>
    %c0_1 = arith.constant 0 : index
    %c0_2 = arith.constant 0 : index
    %1 = vector.load %arg2[%c0_1, %c0_2] : memref<1x32xf32, #tpu.memory_space<vmem>>, vector<1x32xf32>
    %cst = arith.constant dense<0.000000e+00> : vector<8x1xf32>
    %2 = tpu.matmul %0, %1, %cst {dimension_numbers = #tpu.dot_dimension_numbers<[1], [1], [0], [0], [0, 0, 1, 0], [], []>} : vector<8x32xf32>, vector<1x32xf32>, vector<8x1xf32> -> vector<8x1xf32>
    %c0_3 = arith.constant 0 : index
    %c0_4 = arith.constant 0 : index
    %3 = vector.load %arg3[%c0_3, %c0_4] : memref<8x1xf32, #tpu.memory_space<vmem>>, vector<8x1xf32>
    tpu.vector_store %arg3[%c0_3, %c0_4], %2 {strides = array<i32>} : memref<8x1xf32, #tpu.memory_space<vmem>>, vector<8x1xf32>,
    return
  }
  func.func @transform_0(%arg0: i32) -> (i32, i32) {
    %c0_i32 = arith.constant 0 : i32
    %c0_i32_0 = arith.constant 0 : i32
    return %arg0, %c0_i32 : i32, i32
  }
  func.func @transform_1(%arg0: i32) -> (i32, i32) {
    %c0_i32 = arith.constant 0 : i32
    %c0_i32_0 = arith.constant 0 : i32
    %c0_i32_1 = arith.constant 0 : i32
    return %c0_i32, %c0_i32_0 : i32, i32
  }
  func.func @transform_2(%arg0: i32) -> (i32, i32) {
    %c0_i32 = arith.constant 0 : i32
    %c0_i32_0 = arith.constant 0 : i32
    return %arg0, %c0_i32 : i32, i32
  }
}

</mosaic_0001>

<bundles_post_ra>
// kernel: tpu_custom_call.1
= control target key start
LH: loop header
LB: loop body
LE: loop exit
PB: predicated region body
PF: predicated region fallthrough
CT: control target
= control target key end

     0   :  { %7 = vsyncpa [#allocation3], 0  ;;  %s67_s9 = smov [#allocation2]   ;;  %s92_s0 = inlined_call_operand.hbm [shape: f32[8,32], index: 0, kind: input, shape index: {}]   ;;  %s93_s1 = inlined_call_operand.vmem [shape: f32[1,32], index: 1, kind: input, shape index: {}]   ;;  %s94_s2 = inlined_call_operand.vmem [shape: f32[8,1], index: 2, kind: output, shape index: {}]  }
   0x1   :  { %s14_s10 = sshll.u32 %s67_s9, 4  ;;  %s15_s10 = int_to_ptr.vmem [resolvable:$true] %s14_s10 }
   0x2   :  { %s53_s11 = scalar_lea.vmem %s15_s10, 128  ;;  %p58_p1 = scmp.lt.s32.totalorder %s15_s10, %s15_s10 }
   0x3   :  { %p54_p0 = scmp.ne.s32.totalorder %s15_s10, %s53_s11  ;;  %p59_p2 = scmp.lt.s32.totalorder %s53_s11, %s53_s11 }
   0x5   :  { %p60_p3 = por %p59_p2, %p58_p1 }
   0x7   :  { %p61_p4 = pnand %p60_p3, %p54_p0 }
   0x9   :  { %64 = shalt.err (!%p61_p4)
}
   0xa   :  { %17 = dma.hbm_to_vmem [thread:$0]  %s92_s0, 128, %s15_s10, [#allocation3]  }
   0xb   :  { %65 = dma.done.wait [#allocation3], 128  }
   0xc   :  { %66 = vsyncadd [#allocation3], 4294967168  ;;  %v23_v0 = vld [vmem:[#allocation2] sm:$0xff]  ;;  %vm32_vm0 = vcmask 261120   ;;  %vm36_vm1 = vcmask 7168  }
   0xd   :  { %v43_v1 = vld [vmem:[%s93_s1] ss:$0 sm:$0xff] }
   0xe   :  { %v31_v2 = vmul.f32 %v43_v1, %v23_v0 }
  0x10   :  { %v33_v3 = vsel %vm32_vm0, %v31_v2, 0.0 }
  0x11   :  { %34 = vadd.xlane.f32.xlu0 %v33_v3 }
  0x9a   :  { %v35_v4 = vpop.xlane.xlu0 %34 }
  0x9b   :  { %37 = vst.msk [vmem:[%s94_s2] sm:$0xff] %vm36_vm1, %v35_v4 }
  0x9c   :  { %42 = vsyncpa [#allocation3], 1 }

</bundles_post_ra>
